<compile_context>
chip_gen: v6e
topology: v6e:2x2x1
jax: 0.10.0
libtpu: 0.0.40
codegen_flags: <defaults>
</compile_context>

<pallas_src>
import math

import jax
import jax.numpy as jnp
from jax.experimental import pallas as pl
from jax.experimental.pallas import tpu as pltpu


def _temporal_attention_kernel(x_ref, w_qkv_ref, b_qkv_ref, o_ref):
    """One grid step: a block of `Bblk` batches.

    x_ref:     (Bblk, T, H)       activations (bf16 fast path / f32 exact path)
    w_qkv_ref: (H, 3H)            pre-transposed fused [Wq^T*scale | Wk^T | Wv^T]
    b_qkv_ref: (1, 3H)   f32      fused [bq*scale | bk | bv]
    o_ref:     (1, Bblk, T*H)     lane-dense output slab
    """
    Bblk, T, H = x_ref.shape
    mm_dtype = x_ref.dtype        # MXU input dtype (bf16 or f32)

    # Fused QKV projection: the (Bblk,T) x H contraction is a single
    # dot_general; the flatten is absorbed by the matmul (no reshape of x).
    qkv = jnp.einsum("bth,hf->btf", x_ref[...], w_qkv_ref[...],
                     preferred_element_type=jnp.float32)
    qkv = qkv + b_qkv_ref[...]                       # broadcasts over (Bblk, T)

    q = qkv[:, :, 0 * H:1 * H]                       # already carries 1/sqrt(H)
    k = qkv[:, :, 1 * H:2 * H]
    v = qkv[:, :, 2 * H:3 * H]

    # scores[b, i, j] = <Q[b,i], K[b,j]>  (scale folded into Q by the wrapper);
    # last-dim contraction on both operands -> no explicit K transpose.
    scores = jnp.einsum("bqd,bkd->bqk", q.astype(mm_dtype), k.astype(mm_dtype),
                        preferred_element_type=jnp.float32)

    # PyTorch nn.Softmax(dim=1) on (B, T, T): normalize over the *query* axis.
    m = jnp.max(scores, axis=1, keepdims=True)       # (Bblk, 1, T)
    e = jnp.exp(scores - m)
    denom = jnp.sum(e, axis=1, keepdims=True)        # (Bblk, 1, T)
    # EUP approx reciprocal + one Newton refinement (~1e-7 rel error).
    r = pl.reciprocal(denom, approx=True)
    r = r * (2.0 - denom * r)
    attn = e * r

    out = jnp.einsum("bqk,bkh->bqh", attn.astype(mm_dtype), v.astype(mm_dtype),
                     preferred_element_type=jnp.float32)     # (Bblk, T, H)

    # Lane-dense store: refold (T,H) -> (T*H) so the slab is >=128 lanes wide
    # (unmasked vst); the refold relayout lands on the otherwise idle XLU slot.
    o_ref[...] = out.reshape(o_ref.shape).astype(o_ref.dtype)


def _step_vmem_bytes(bb, T, H, in_bytes, out_bytes):
    """Rough per-step VMEM footprint: double-buffered x/out blocks, (default
    double-buffered) fused weights, plus f32 intermediates (qkv/scores/out)."""
    x_blk = 2 * bb * T * H * in_bytes
    o_blk = 2 * bb * T * H * out_bytes
    w_blk = 2 * (H * 3 * H * in_bytes + 3 * H * 4)
    interm = bb * T * (4 * H + 2 * T) * 4
    return x_blk + o_blk + w_blk + interm


def _pick_batch_block(B, T, H, in_bytes, out_bytes,
                      target_rows=1024, vmem_budget=16 * 1024 * 1024):
    """Pick batch_block so each grid step projects ~target_rows rows
    (batch_block*T), fits a conservative VMEM budget (safe even on v7x's
    64 MiB), and the grid has >= 2 steps whenever B > 1 (so the BlockSpec
    pipeline can hide DMA under compute and v7x megacore can split the grid)."""
    bb = max(1, min(B, max(1, target_rows // max(T, 1))))
    if B > 1:
        bb = max(1, min(bb, B // 2))          # keep at least 2 grid steps
    while bb > 1 and (B % bb != 0
                      or _step_vmem_bytes(bb, T, H, in_bytes, out_bytes) > vmem_budget):
        bb -= 1
    return bb


def temporal_attention(x, wq, bq, wk, bk, wv, bv, *,
                       batch_block=None, use_bf16=True):
    """TemporalAttention forward.

    x: (B, T, H). wq/wk/wv: (H, H) in PyTorch (out, in) convention. b*: (H,).
    Returns (B, T, H) in x.dtype.
    """
    B, T, H = x.shape
    out_dtype = x.dtype

    # --- wrapper-side (free) prep ------------------------------------------
    # Fuse + pre-transpose the three projections into one (H, 3H) matrix and
    # fold the 1/sqrt(H) score scale into the Q columns (weights AND bias):
    # one MXU matmul in the kernel, no score multiply.
    scale = 1.0 / math.sqrt(float(H))
    w_qkv = jnp.concatenate([wq.T * scale, wk.T, wv.T], axis=1)       # (H, 3H)
    b_qkv = jnp.concatenate([bq * scale, bk, bv]).reshape(1, 3 * H)   # (1, 3H)

    # bf16 MXU operands (halves x DMA bytes); accumulation + softmax stay f32.
    mm_dtype = jnp.bfloat16 if use_bf16 else x.dtype
    x_in = x.astype(mm_dtype)
    w_qkv = w_qkv.astype(mm_dtype)
    b_qkv = b_qkv.astype(jnp.float32)

    in_bytes = jnp.dtype(mm_dtype).itemsize
    out_bytes = jnp.dtype(out_dtype).itemsize
    if batch_block is None:
        batch_block = _pick_batch_block(B, T, H, in_bytes, out_bytes)
    assert B % batch_block == 0, "batch_block must divide B"
    num_blocks = B // batch_block

    # Explicit scoped-VMEM limit (defaults: 16 MiB v5e / 32 MiB v6e+), with
    # headroom but below v7x's 64 MiB physical VMEM.
    est = _step_vmem_bytes(batch_block, T, H, in_bytes, out_bytes)
    vmem_limit = int(min(48 * 1024 * 1024, max(16 * 1024 * 1024, 4 * est)))

    # Lane-dense output slab: (num_blocks, batch_block, T*H); reshaped back to
    # (B, T, H) outside the kernel (same HBM bytes, unmasked stores inside).
    out_slab = pl.pallas_call(
        _temporal_attention_kernel,
        out_shape=jax.ShapeDtypeStruct((num_blocks, batch_block, T * H), out_dtype),
        grid_spec=pltpu.PrefetchScalarGridSpec(
            num_scalar_prefetch=0,
            grid=(num_blocks,),
            in_specs=[
                pl.BlockSpec((batch_block, T, H), lambda i: (i, 0, 0)),   # x
                pl.BlockSpec((H, 3 * H), lambda i: (0, 0)),               # W_qkv
                pl.BlockSpec((1, 3 * H), lambda i: (0, 0)),               # b_qkv
            ],
            out_specs=pl.BlockSpec((1, batch_block, T * H), lambda i: (i, 0, 0)),
        ),
        # Batch-block axis is embarrassingly parallel: with >= 2 grid steps,
        # v7x's two TensorCores split it; harmless (no-op) on v5e/v6e.
        compiler_params=pltpu.CompilerParams(
            dimension_semantics=("parallel",),
            vmem_limit_bytes=vmem_limit),
    )(x_in, w_qkv, b_qkv)
    return out_slab.reshape(B, T, H)


def _reference(x, wq, bq, wk, bk, wv, bv):
    # Pure-JAX reference mirroring the PyTorch forward exactly (f32).
    q = jnp.einsum("bth,oh->bto", x, wq) + bq
    k = jnp.einsum("bth,oh->bto", x, wk) + bk
    v = jnp.einsum("bth,oh->bto", x, wv) + bv
    scores = jnp.einsum("bqh,bkh->bqk", q, k) / math.sqrt(x.shape[-1])
    attn = jax.nn.softmax(scores, axis=1)     # dim=1, as in the PyTorch module
    return jnp.einsum("bqk,bkh->bqh", attn, v)


if __name__ == "__main__":
    B, T, H = 2, 8, 32
    key = jax.random.PRNGKey(0)
    kx, kq, kbq, kk, kbk, kv, kbv = jax.random.split(key, 7)

    x = jax.random.normal(kx, (B, T, H), dtype=jnp.float32)

    # Deterministic nn.Linear-style init: U(-1/sqrt(H), 1/sqrt(H))
    bound = 1.0 / math.sqrt(H)
    wq = jax.random.uniform(kq, (H, H), jnp.float32, -bound, bound)
    bq = jax.random.uniform(kbq, (H,), jnp.float32, -bound, bound)
    wk = jax.random.uniform(kk, (H, H), jnp.float32, -bound, bound)
    bk = jax.random.uniform(kbk, (H,), jnp.float32, -bound, bound)
    wv = jax.random.uniform(kv, (H, H), jnp.float32, -bound, bound)
    bv = jax.random.uniform(kbv, (H,), jnp.float32, -bound, bound)

    ref = _reference(x, wq, bq, wk, bk, wv, bv)

    # Exact f32 path: must match the f32 reference to 1e-4.
    out_f32 = jax.block_until_ready(
        temporal_attention(x, wq, bq, wk, bk, wv, bv, use_bf16=False))
    assert out_f32.shape == (B, T, H)
    assert jnp.allclose(out_f32, ref, atol=1e-4, rtol=1e-4), "f32 mismatch"

    # bf16-MXU fast path (default): looser tolerance, as flagged in the review.
    out_bf16 = jax.block_until_ready(
        temporal_attention(x, wq, bq, wk, bk, wv, bv, use_bf16=True))
    assert out_bf16.shape == (B, T, H)
    assert jnp.allclose(out_bf16, ref, atol=2e-2, rtol=2e-2), "bf16 mismatch"

    print("KERNEL_OK")
</pallas_src>

<mosaic_0001>
module attributes {stable_mosaic.version = 11 : i64} {
  func.func @_temporal_attention_kernel(%arg0: i32, %arg1: memref<1x8x32xf32, #tpu.memory_space<vmem>>, %arg2: memref<32x96xf32, #tpu.memory_space<vmem>>, %arg3: memref<1x96xf32, #tpu.memory_space<vmem>>, %arg4: memref<1x1x256xf32, #tpu.memory_space<vmem>>) attributes {dimension_semantics = [#tpu.dimension_semantics<parallel>], iteration_bounds = array<i64: 2>, scalar_prefetch = 0 : i64, scratch_operands = 0 : i64, tpu.core_type = #tpu.core_type<tc>, window_params = [{transform_indices = @transform_0, window_bounds = array<i64: 1, 8, 32>}, {pipeline_mode = #tpu.pipeline_mode<synchronous>, transform_indices = @transform_1, window_bounds = array<i64: 32, 96>}, {pipeline_mode = #tpu.pipeline_mode<synchronous>, transform_indices = @transform_2, window_bounds = array<i64: 1, 96>}, {transform_indices = @transform_3, window_bounds = array<i64: 1, 1, 256>}]} {
    %c0 = arith.constant 0 : index
    %c0_0 = arith.constant 0 : index
    %c0_1 = arith.constant 0 : index
    %0 = vector.load %arg1[%c0, %c0_0, %c0_1] : memref<1x8x32xf32, #tpu.memory_space<vmem>>, vector<1x8x32xf32>
    %c0_2 = arith.constant 0 : index
    %c0_3 = arith.constant 0 : index
    %1 = vector.load %arg2[%c0_2, %c0_3] : memref<32x96xf32, #tpu.memory_space<vmem>>, vector<32x96xf32>
    "tpu.trace_start"() <{level = 10 : i32, message = "bth,hf->btf"}> : () -> ()
    %cst = arith.constant dense<0.000000e+00> : vector<1x8x96xf32>
    %2 = tpu.matmul %0, %1, %cst {dimension_numbers = #tpu.dot_dimension_numbers<[2], [0], [0, 1], [1], [0, 0, 0, 1, 1, 1], [], []>} : vector<1x8x32xf32>, vector<32x96xf32>, vector<1x8x96xf32> -> vector<1x8x96xf32>
    "tpu.trace_stop"() : () -> ()
    %c0_4 = arith.constant 0 : index
    %c0_5 = arith.constant 0 : index
    %3 = vector.load %arg3[%c0_4, %c0_5] : memref<1x96xf32, #tpu.memory_space<vmem>>, vector<1x96xf32>
    %4 = vector.shape_cast %3 : vector<1x96xf32> to vector<1x1x96xf32>
    %5 = vector.broadcast %4 : vector<1x1x96xf32> to vector<1x8x96xf32>
    %6 = arith.addf %2, %5 : vector<1x8x96xf32>
    %7 = vector.extract_strided_slice %6 {offsets = [0, 0, 0], sizes = [1, 8, 32], strides = [1, 1, 1]} : vector<1x8x96xf32> to vector<1x8x32xf32>
    %8 = vector.extract_strided_slice %6 {offsets = [0, 0, 32], sizes = [1, 8, 32], strides = [1, 1, 1]} : vector<1x8x96xf32> to vector<1x8x32xf32>
    %9 = vector.extract_strided_slice %6 {offsets = [0, 0, 64], sizes = [1, 8, 32], strides = [1, 1, 1]} : vector<1x8x96xf32> to vector<1x8x32xf32>
    "tpu.trace_start"() <{level = 10 : i32, message = "bqd,bkd->bqk"}> : () -> ()
    %cst_6 = arith.constant dense<0.000000e+00> : vector<1x8x8xf32>
    %10 = tpu.matmul %7, %8, %cst_6 {dimension_numbers = #tpu.dot_dimension_numbers<[2], [2], [1], [1], [0, 0, 0, 1, 1, 1], [0], [0]>} : vector<1x8x32xf32>, vector<1x8x32xf32>, vector<1x8x8xf32> -> vector<1x8x8xf32>
    "tpu.trace_stop"() : () -> ()
    %cst_7 = arith.constant dense<0xFF800000> : vector<1x8xf32>
    %11 = vector.multi_reduction <maximumf>, %10, %cst_7 [1] : vector<1x8x8xf32> to vector<1x8xf32>
    %12 = vector.shape_cast %11 : vector<1x8xf32> to vector<1x1x8xf32>
    %13 = vector.broadcast %12 : vector<1x1x8xf32> to vector<1x8x8xf32>
    %14 = arith.subf %10, %13 : vector<1x8x8xf32>
    %15 = math.exp %14 : vector<1x8x8xf32>
    %cst_8 = arith.constant dense<0.000000e+00> : vector<1x8xf32>
    %16 = vector.multi_reduction <add>, %15, %cst_8 [1] : vector<1x8x8xf32> to vector<1x8xf32>
    %17 = vector.shape_cast %16 : vector<1x8xf32> to vector<1x1x8xf32>
    %18 = tpu.reciprocal %17 {approx = true} : vector<1x1x8xf32> -> vector<1x1x8xf32>
    %19 = arith.mulf %17, %18 : vector<1x1x8xf32>
    %cst_9 = arith.constant 2.000000e+00 : f32
    %20 = vector.broadcast %cst_9 : f32 to vector<1x1x8xf32>
    %21 = arith.subf %20, %19 : vector<1x1x8xf32>
    %22 = arith.mulf %18, %21 : vector<1x1x8xf32>
    %23 = vector.broadcast %22 : vector<1x1x8xf32> to vector<1x8x8xf32>
    %24 = arith.mulf %15, %23 : vector<1x8x8xf32>
    "tpu.trace_start"() <{level = 10 : i32, message = "bqk,bkh->bqh"}> : () -> ()
    %cst_10 = arith.constant dense<0.000000e+00> : vector<1x8x32xf32>
    %25 = tpu.matmul %24, %9, %cst_10 {dimension_numbers = #tpu.dot_dimension_numbers<[2], [1], [1], [2], [0, 0, 0, 1, 1, 2], [0], [0]>} : vector<1x8x8xf32>, vector<1x8x32xf32>, vector<1x8x32xf32> -> vector<1x8x32xf32>
    "tpu.trace_stop"() : () -> ()
    %26 = vector.shape_cast %25 : vector<1x8x32xf32> to vector<1x1x256xf32>
    %c0_11 = arith.constant 0 : index
    %c0_12 = arith.constant 0 : index
    %c0_13 = arith.constant 0 : index
    %27 = vector.load %arg4[%c0_11, %c0_12, %c0_13] : memref<1x1x256xf32, #tpu.memory_space<vmem>>, vector<1x1x256xf32>
    tpu.vector_store %arg4[%c0_11, %c0_12, %c0_13], %26 {strides = array<i32>} : memref<1x1x256xf32, #tpu.memory_space<vmem>>, vector<1x1x256xf32>,
    return
  }
  func.func @transform_0(%arg0: i32) -> (i32, i32, i32) {
    %c0_i32 = arith.constant 0 : i32
    %c0_i32_0 = arith.constant 0 : i32
    %c0_i32_1 = arith.constant 0 : i32
    return %arg0, %c0_i32, %c0_i32_0 : i32, i32, i32
  }
  func.func @transform_1(%arg0: i32) -> (i32, i32) {
    %c0_i32 = arith.constant 0 : i32
    %c0_i32_0 = arith.constant 0 : i32
    %c0_i32_1 = arith.constant 0 : i32
    return %c0_i32, %c0_i32_0 : i32, i32
  }
  func.func @transform_2(%arg0: i32) -> (i32, i32) {
    %c0_i32 = arith.constant 0 : i32
    %c0_i32_0 = arith.constant 0 : i32
    %c0_i32_1 = arith.constant 0 : i32
    return %c0_i32, %c0_i32_0 : i32, i32
  }
  func.func @transform_3(%arg0: i32) -> (i32, i32, i32) {
    %c0_i32 = arith.constant 0 : i32
    %c0_i32_0 = arith.constant 0 : i32
    %c0_i32_1 = arith.constant 0 : i32
    return %arg0, %c0_i32, %c0_i32_0 : i32, i32, i32
  }
}

</mosaic_0001>

<bundles_post_ra>
// kernel: tpu_custom_call.1
= control target key start
LH: loop header
LB: loop body
LE: loop exit
PB: predicated region body
PF: predicated region fallthrough
CT: control target
= control target key end

     0   :  { %8 = vsyncpa [#allocation3], 0  ;;  %s1132_s0 = inlined_call_operand.hbm [shape: f32[2,8,32], index: 0, kind: input, shape index: {}]   ;;  %s1133_s1 = inlined_call_operand.hbm [shape: f32[32,96], index: 1, kind: input, shape index: {}]   ;;  %s1134_s2 = inlined_call_operand.vmem [shape: f32[1,96], index: 2, kind: input, shape index: {}]   ;;  %s1135_s3 = inlined_call_operand.hbm [shape: f32[2,1,256], index: 3, kind: output, shape index: {}]  }
   0x1   :  { %10 = vsyncpa [#allocation3 + $0x1], 0 }
   0x2   :  { %11 = vsyncpa [#allocation6], 0 }
   0x3   :  { %12 = vsyncpa [#allocation4], 0 }
   0x4   :  { %14 = vsyncpa [#allocation4 + $0x1], 0  ;;  %s941_s12 = smov 0   ;;  %s943_s13 = smov 0  }
   0x5   :  { %s945_s14 = smov 0   ;;  %s947_s15 = smov 0  }
   0x6 LB: > { %s962_s16 = sadd.s32 4294967295, %s906_s15   ;;  %s662_s17 = sadd.s32 4294967294, %s906_s15   ;;  %s906_s15 = sphi %s947_s15, %s1157_s15   ;;  %s902_s14 = sphi %s945_s14, %s1156_s14   ;;  %s898_s13 = sphi %s943_s13, %s1155_s13   ;;  %s894_s12 = sphi %s941_s12, %s1154_s12  }
   0x7   : > { %p40_p0 = scmp.ne.s32.totalorder %s898_s13, %s894_s12  ;;  %p1136_p1 = scmp.eq.s32.totalorder %s962_s16, 0 }
   0x8   : > { %p112_p3 = scmp.eq.s32.totalorder %s662_s17, 1  ;;  %p663_p5 = scmp.ge.s32.totalorder %s906_s15, 1 }
   0x9   : > { %p971_p4 = por %p1136_p1, %p40_p0  ;;  %p119_p7 = scmp.lt.s32.totalorder %s906_s15, 3 }
   0xa   : > { %p976_p6 = por %p112_p3, %p40_p0  ;;  %s908_s21 = smov [#allocation5]  }
   0xb   : > { %s1140_s18 = scalar_select %p971_p4, 1, 0 }
   0xc   : > { %s1141_s19 = scalar_select %p976_p6, 1, 0 }
   0xd   : > { %p981_p8 = pnand %p663_p5, %p119_p7  ;;  %s131_s22 = sshll.u32 %s908_s21, 4  ;;  %s132_s22 = int_to_ptr.vmem [resolvable:$true] %s131_s22 }
   0xe   : > { %s995_s24 = sadd.s32 1, %s906_s15   ;;  %s27_s25 = sadd.s32 1, %s902_s14 }
   0xf   : > { %s1142_s20 = scalar_select %p981_p8, 1, 0 }
  0x10   : > { %p721_p9 = pneg %p981_p8  ;;  %s24_s26 = ssub.s32 %s906_s15, %s995_s24 }
  0x11   : > { %s795_s27 = scalar_lea.vmem %s132_s22, 512  ;;  %p803_p5 = scmp.lt.s32.totalorder %s132_s22, %s132_s22 }
  0x12   : > { %p990_p11 = pnand %p721_p9, %p1136_p1  ;;  %p796_p13 = scmp.ne.s32.totalorder %s132_s22, %s795_s27 }
  0x13   : > { %p804_p7 = scmp.lt.s32.totalorder %s795_s27, %s795_s27 }
  0x14   : > { %p786_p12 = pneg %p990_p11 }
  0x15   : > { %p805_p10 = por %p804_p7, %p803_p5 }
  0x16   : > { %p798_p0 = pnand %p796_p13, %p786_p12 }
  0x18   : > { %p799_p3 = pneg %p798_p0 }
  0x1a   : > { %p806_p2 = pnand %p805_p10, %p799_p3 }
  0x1c   : > { %809 = shalt.err (!%p806_p2)
}
  0x1d   : > { %s909_s28 = smov 128   ;;  %s910_s29 = smov 8  }
  0x1e   : > { %724 = dma.hbm_to_vmem [thread:$0]  (!%p990_p11), %s1133_s1, 512, %s132_s22, [#allocation6], %s909_s28, %s909_s28, %s910_s29  }
  0x1f   : > { %p25_p9 = scmp.eq.s32.totalorder %s24_s26, 0  ;;  %p34_p12 = scmp.ne.s32.totalorder %s902_s14, %s898_s13 }
  0x20   : > { %p35_p10 = scmp.eq.s32.totalorder %s906_s15, 0  ;;  %p734_p2 = scmp.lt.s32.totalorder %s906_s15, 2 }
  0x21   : > { %s1012_s5 = scalar_select %p25_p9, %s902_s14, %s27_s25  }
  0x22   : > { %p36_p13 = por %p35_p10, %p34_p12  ;;  %p1144_p0 = scmp.eq.s32.totalorder %s962_s16, 1 }
  0x23   : > { %s148_s7 = sand.u32 1, %s902_s14   ;;  %s667_s8 = sshll.u32 %s906_s15, 7 }
  0x24   : > { %p1016_p3 = por %p1144_p0, %p34_p12  ;;  %s666_s9 = sshll.u32 %s148_s7, 3 }
  0x25   : > { %s1025_s17 = scalar_lea.hbm %s1132_s0, %s667_s8  ;;  %s152_s21 = scalar_lea.vmem [#allocation2], %s666_s9 }
  0x26   : > { %s1145_s6 = scalar_select %p1016_p3, 1, 0 }
  0x27   : > { %s159_s22 = sshll.u32 %s152_s21, 4  ;;  %p1027_p11 = pnand %p734_p2, %p36_p13  ;;  %s160_s22 = int_to_ptr.vmem [resolvable:$true] %s159_s22 }
  0x28   : > { %s149_s25 = scalar_lea.sflag [#allocation3], %s148_s7  ;;  %s810_s26 = scalar_lea.hbm %s1025_s17, 128 }
  0x29   : > { %p811_p5 = scmp.ne.s32.totalorder %s1025_s17, %s810_s26  ;;  %p812_p7 = pneg %p1027_p11 }
  0x2a   : > { %s815_s29 = scalar_lea.hbm %s1132_s0, 256  ;;  %p816_p10 = scmp.lt.s32.totalorder %s1025_s17, %s1132_s0 }
  0x2b   : > { %p813_p9 = pnand %p812_p7, %p811_p5  ;;  %p817_p2 = scmp.lt.s32.totalorder %s815_s29, %s810_s26 }
  0x2d   : > { %p814_p12 = pneg %p813_p9  ;;  %p818_p13 = por %p817_p2, %p816_p10 }
  0x2f   : > { %p819_p0 = pnand %p818_p13, %p814_p12 }
  0x31   : > { %822 = shalt.err (!%p819_p0)
}
  0x32   : > { %s823_s8 = scalar_lea.vmem %s160_s22, 128  ;;  %s911_s7 = smov [#allocation2]  }
  0x33   : > { %p824_p1 = scmp.ne.s32.totalorder %s160_s22, %s823_s8  ;;  %s828_s9 = sshll.u32 %s911_s7, 4  ;;  %s829_s9 = int_to_ptr.vmem [resolvable:$false] %s828_s9 }
  0x34   : > { %s830_s10 = scalar_lea.vmem %s829_s9, 256  ;;  %p831_p5 = scmp.lt.s32.totalorder %s160_s22, %s829_s9 }
  0x35   : > { %p826_p6 = pnand %p824_p1, %p812_p7  ;;  %p832_p9 = scmp.lt.s32.totalorder %s830_s10, %s823_s8 }
  0x37   : > { %p827_p3 = pneg %p826_p6  ;;  %p833_p4 = por %p832_p9, %p831_p5 }
  0x39   : > { %p834_p8 = pnand %p833_p4, %p827_p3 }
  0x3b   : > { %837 = shalt.err (!%p834_p8)
}
  0x3c   : > { %728 = dma.hbm_to_vmem [thread:$0]  (!%p1027_p11), %s1025_s17, 128, %s160_s22, %s149_s25  }
  0x3d   : > { %p1147_p12 = scmp.ne.s32.totalorder %s1142_s20, 0 }
  0x3e   : > { %s1048_s11 = sand.u32 (!%p1147_p12), 1, %s898_s13   ;;  %p1148_p1 = scmp.ne.s32.totalorder (!%p1147_p12), %s1140_s18, 0 }
  0x3f   : > { %168 = sbr.rel (%p1147_p12) target bundleno = 1000 (0x3e8), region = 32  ;;  %s669_s21 = sshll.u32 (!%p1147_p12), %s1048_s11, 3 }
  0x40   : > { %s171_s26 = scalar_lea.sflag (!%p1147_p12), [#allocation3], %s1048_s11  ;;  %s174_s27 = scalar_lea.vmem (!%p1147_p12), [#allocation2], %s669_s21 }
  0x44   : > { %881 = dma.done.wait (%p1148_p1), %s171_s26, 128  }
  0x45   : > { %883 = vsyncadd (%p1148_p1), %s171_s26, 4294967168  ;;  %p1149_p4 = scmp.eq.s32.totalorder %s962_s16, 0 }
  0x47   : > { %885 = dma.done.wait (%p1149_p4), [#allocation6], 512   ;;  %p1150_p6 = pmov %p1149_p4 }
  0x48   : > { %v912_v0 = vmov 0.0   ;;  %vm913_vm0 = vmmov 0   ;;  %v205_v1 = vld [vmem:[#allocation5 + $0x18] sm:$0xff]  ;;  %v204_v2 = vld [vmem:[#allocation5 + $0x10] sm:$0xff]  ;;  %v203_v3 = vld [vmem:[#allocation5 + $0x8] sm:$0xff]  ;;  %vm213_vm1 = vcmask 261120   ;;  %v467_v38 = vlaneseq }
  0x49   : > { %887 = vsyncadd (%p1150_p6), [#allocation6], 4294966784  ;;  %692 = vmatprep.subr.mxu0 %v912_v0  ;;  %700 = vmatprep.mubr.msk.f32.mxu0 %vm913_vm0, %v912_v0  ;;  %v202_v4 = vld [vmem:[#allocation5] sm:$0xff]  ;;  %v201_v5 = vld [vmem:[%s174_s27] sm:$0xff]  ;;  %s914_s17 = smov 96   ;;  %s915_s22 = smov 64  }
  0x4a   : > { %703 = vmatprep.subr.mxu1 %v912_v0  ;;  %705 = vmatprep.mubr.msk.f32.mxu1 %vm913_vm0, %v912_v0  ;;  %v672_v6 = vld [vmem:[%s1134_s2] ss:$0 sm:$0xff]  ;;  %vm364_vm2 = vcmask 64512   ;;  %v916_v36 = vmov 1983009808   ;;  %v468_v42 = vshrl.u32 %v467_v38, 7 }
  0x4b   : > { %693 = vmatpush3.msra.mxu0 %v205_v1  ;;  %v465_v37 = vunpack.c.l.s4 %v916_v36  ;;  %v917_v39 = vmov 1934713408   ;;  %s918_s23 = smov 32   ;;  %v919_v1 = vmov 1966171168   ;;  %vm537_vm3 = vcmask 523264  }
  0x4c   : > { %694 = vmatprep.subr.mxu0 %v912_v0  ;;  %v480_v40 = vunpack.c.l.s4 %v917_v39  ;;  %s671_s25 = sshll.u32 %s1048_s11, 1  ;;  %vm539_vm4 = vcmask 785408   ;;  %s682_s28 = sshll.u32 %s962_s16, 5  ;;  %vm564_vm5 = vcmp.lt.s32.totalorder %v467_v38, 256 }
  0x4d   : > { %695 = vmatpush3.msra.mxu0 %v204_v2  ;;  %v466_v41 = vunpack.c.0.s8 %v465_v37  ;;  %v548_v2 = vunpack.c.l.s4 %v919_v1  ;;  %s200_s29 = scalar_lea.vmem [#allocation7], %s671_s25  ;;  %s580_s7 = scalar_lea.hbm %s1135_s3, %s682_s28 }
  0x4e   : > { %696 = vmatprep.subr.mxu0 %v912_v0  ;;  %v481_v43 = vunpack.c.0.s8 %v480_v40  ;;  %s582_s30 = sshll.u32 %s200_s29, 4  ;;  %s568_s9 = scalar_lea.sflag [#allocation4], %s1048_s11  ;;  %s583_s30 = int_to_ptr.vmem [resolvable:$true] %s582_s30 }
  0x4f   : > { %697 = vmatpush3.msra.mxu0 %v203_v3  ;;  %v469_v44 = vsub.s32 %v466_v41, %v468_v42  ;;  %s838_s10 = scalar_lea.vmem %s583_s30, 32  ;;  %p1151_p3 = scmp.ne.s32.totalorder %s1145_s6, 0 }
  0x50   : > { %698 = vmatprep.subr.mxu0 %v912_v0  ;;  %v484_v45 = vsub.s32 %v481_v43, %v468_v42  ;;  %p839_p8 = scmp.ne.s32.totalorder %s583_s30, %s838_s10  ;;  %s920_s21 = smov [#allocation7]  }
  0x51   : > { %699 = vmatpush3.msra.mxu0 %v202_v4  ;;  %v549_v4 = vunpack.c.0.s8 %v548_v2  ;;  %s842_s26 = sshll.u32 %s920_s21, 4  ;;  %s843_s26 = int_to_ptr.vmem [resolvable:$false] %s842_s26 }
  0x52   : > { %701 = vmatmul.mubr.msk.f32.vlgmr.msra.gmra.mxu0 %vm213_vm1, %v201_v5  ;;  %p840_p11 = pnand %p839_p8, %p1151_p3  ;;  %s844_s16 = scalar_lea.vmem %s843_s26, 64 }
  0x53   : > { %p845_p10 = scmp.lt.s32.totalorder %s583_s30, %s843_s26  ;;  %p846_p2 = scmp.lt.s32.totalorder %s844_s16, %s838_s10 }
  0x54   : > { %p841_p7 = pneg %p840_p11 }
  0x55   : > { %p847_p13 = por %p846_p2, %p845_p10 }
  0x57   : > { %p848_p0 = pnand %p847_p13, %p841_p7 }
 0x112   : > { %v283_v7 = vpop.f32.mrf.mxu0 }
 0x113   : > { %v284_v8 = vadd.f32 %v672_v6, %v283_v7 }
 0x114   : > { %v702_v9 = vpop.f32.mrf.mxu0 }
 0x115   : > { %288 = vrot.lane.b32.xlu0 %v284_v8, %s914_s17  ;;  %v552_v9 = vsub.s32 %v549_v4, %v468_v42 }
 0x119   : > { %387 = vrot.lane.b32.xlu0 %v284_v8, %s915_s22 }
 0x187   : > { %v289_v10 = vpop.permute.xlu0 %288 }
 0x188   : > { %704 = vmatpush3.xpose.msk.msra.mxu1 %vm213_vm1, %v289_v10 }
 0x189   : > { %708 = vmatprep.subr.mxu1 %v912_v0 }
 0x18b   : > { %706 = vmatmul.mubr.msk.f32.vlgmr.msra.gmra.mxu1 %vm213_vm1, %v284_v8  ;;  %v388_v11 = vpop.permute.xlu0 %387 }
 0x18c   : > { %709 = vmatpush3.msra.mxu1 %v388_v11  ;;  %710 = vmatprep.mubr.msk.f32.mxu1 %vm913_vm0, %v912_v0 }
 0x24b   : > { %v360_v12 = vpop.f32.mrf.mxu1 }
 0x24c   : > { %v365_v13 = vsel %vm364_vm2, %v360_v12, -inf }
 0x24d   : > { %v366_v14 = vrot.slane %v365_v13, 4  ;;  %v707_v15 = vpop.f32.mrf.mxu1 }
 0x24f   : > { %v367_v16 = vmax.f32 %v365_v13, %v366_v14 }
 0x251   : > { %v368_v17 = vrot.slane %v367_v16, 2 }
 0x253   : > { %v369_v18 = vmax.f32 %v367_v16, %v368_v17 }
 0x255   : > { %v370_v19 = vrot.slane %v369_v18, 1 }
 0x257   : > { %v371_v20 = vmax.f32 %v369_v18, %v370_v19 }
 0x259   : > { %v372_v21 = vsub.f32 %v360_v12, %v371_v20 }
 0x25b   : > { %v373_v22 = vmul.f32 1.442695, %v372_v21 }
 0x25d   : > { %780 = vpow2.f32 %v373_v22 }
 0x26a   : > { %v781_v23 = vpop.eup %780 }
 0x26b   : > { %v375_v24 = vsel %vm364_vm2, %v781_v23, 0.0 }
 0x26c   : > { %v376_v25 = vrot.slane %v375_v24, 4 }
 0x26e   : > { %v377_v26 = vadd.f32 %v376_v25, %v375_v24 }
 0x270   : > { %v378_v27 = vrot.slane %v377_v26, 2 }
 0x272   : > { %v379_v28 = vadd.f32 %v378_v27, %v377_v26 }
 0x274   : > { %v380_v29 = vrot.slane %v379_v28, 1 }
 0x276   : > { %v381_v30 = vadd.f32 %v380_v29, %v379_v28 }
 0x278   : > { %782 = vrcp.f32 %v381_v30 }
 0x285   : > { %v783_v31 = vpop.eup %782 }
 0x286   : > { %v383_v32 = vmul.f32 %v783_v31, %v381_v30 }
 0x288   : > { %v384_v33 = vsub.f32 2.0, %v383_v32 }
 0x28a   : > { %v385_v34 = vmul.f32 %v783_v31, %v384_v33 }
 0x28c   : > { %v386_v35 = vmul.f32 %v781_v23, %v385_v34 }
 0x28e   : > { %711 = vmatmul.mubr.msk.f32.vlgmr.msra.gmra.mxu1 %vm364_vm2, %v386_v35 }
 0x34e   : > { %v459_v46 = vpop.f32.mrf.mxu1 }
 0x34f   : > { %v463_v47 = vcombine.high %v459_v46, %v912_v0  ;;  %v470_v48 = vrot.slane %v459_v46, %v469_v44 }
 0x350   : > { %v712_v49 = vpop.f32.mrf.mxu1 }
 0x351   : > { %v477_v50 = vrot.slane %v463_v47, %v469_v44  ;;  %v478_v51 = vcombine.high %v470_v48, %v912_v0  ;;  %v485_v52 = vrot.slane %v470_v48, %v484_v45 }
 0x353   : > { %v500_v53 = vrot.slane %v477_v50, %v484_v45  ;;  %v508_v54 = vcombine.high %v485_v52, %v912_v0  ;;  %v492_v55 = vrot.slane %v478_v51, %v484_v45  ;;  %v493_v56 = vcombine.high %v477_v50, %v912_v0 }
 0x355   : > { %513 = vrot.lane.b32.xlu1 %v508_v54, %s918_s23  ;;  %517 = vrot.lane.b32.xlu0 %v492_v55, %s915_s22  ;;  %v509_v57 = vcombine.high %v492_v55, %v912_v0  ;;  %v510_v58 = vcombine.high %v500_v53, %v912_v0  ;;  %v507_v59 = vrot.slane %v493_v56, %v484_v45 }
 0x357   : > { %v511_v60 = vcombine.high %v507_v59, %v912_v0 }
 0x359   : > { %521 = vrot.lane.b32.xlu0 %v509_v57, %s914_s17  ;;  %525 = vrot.lane.b32.xlu1 %v510_v58, %s918_s23 }
 0x35d   : > { %529 = vrot.lane.b32.xlu1 %v507_v59, %s915_s22 }
 0x361   : > { %533 = vrot.lane.b32.xlu1 %v511_v60, %s914_s17 }
 0x3c7   : > { %v514_v61 = vpop.permute.xlu1 %513  ;;  %v518_v62 = vpop.permute.xlu0 %517 }
 0x3c8   : > { %v536_v5 = vsel %vm213_vm1, %v485_v52, %v514_v61 }
 0x3c9   : > { %v538_v8 = vsel %vm537_vm3, %v536_v5, %v518_v62 }
 0x3cb   : > { %v526_v63 = vpop.permute.xlu1 %525  ;;  %v522_v6 = vpop.permute.xlu0 %521 }
 0x3cc   : > { %v541_v7 = vsel %vm213_vm1, %v500_v53, %v526_v63  ;;  %v540_v11 = vsel %vm539_vm4, %v538_v8, %v522_v6 }
 0x3cf   : > { %v530_v3 = vpop.permute.xlu1 %529 }
 0x3d0   : > { %v542_v0 = vsel %vm537_vm3, %v541_v7, %v530_v3 }
 0x3d3   : > { %v534_v10 = vpop.permute.xlu1 %533 }
 0x3d4   : > { %v543_v12 = vsel %vm539_vm4, %v542_v0, %v534_v10 }
 0x3d5   : > { %v546_v13 = vcombine.low %v540_v11, %v543_v12 }
 0x3d7   : > { %v553_v14 = vrot.slane %v546_v13, %v552_v9 }
 0x3d9   : > { %v560_v15 = vrot.slane %v553_v14, %v552_v9 }
 0x3db   : > { %566 = vst.msk [vmem:[%s200_s29] sm:$0x3] %vm564_vm5, %v560_v15 }
 0x3dc   : > { %851 = shalt.err (!%p848_p0)
}
 0x3dd   : > { %s852_s27 = scalar_lea.hbm %s580_s7, 32  ;;  %s856_s20 = scalar_lea.hbm %s1135_s3, 64 }
 0x3de   : > { %p853_p5 = scmp.ne.s32.totalorder %s580_s7, %s852_s27  ;;  %p857_p1 = scmp.lt.s32.totalorder %s580_s7, %s1135_s3 }
 0x3df   : > { %p858_p4 = scmp.lt.s32.totalorder %s856_s20, %s852_s27 }
 0x3e0   : > { %p854_p9 = pnand %p853_p5, %p1151_p3 }
 0x3e1   : > { %p859_p6 = por %p858_p4, %p857_p1 }
 0x3e2   : > { %p855_p12 = pneg %p854_p9 }
 0x3e4   : > { %p860_p8 = pnand %p859_p6, %p855_p12 }
 0x3e6   : > { %863 = shalt.err (!%p860_p8)
}
 0x3e7   : > { %719 = dma.vmem_to_hbm [thread:$0]  (%p1151_p3), %s583_s30, 32, %s580_s7, %s568_s9  }
 0x3e8 PF: > { %s594_s23 = sand.u32 1, %s894_s12   ;;  %p1152_p11 = scmp.ne.s32.totalorder %s1141_s19, 0 }
 0x3e9   : > { %p1153_p7 = scmp.ge.s32.totalorder %s906_s15, 2  ;;  %s595_s25 = scalar_lea.sflag [#allocation4], %s594_s23 }
 0x3eb   : > { %p730_p10 = pnand %p1153_p7, %p1152_p11 }
 0x3ed   : > { %p731_p2 = pneg %p730_p10 }
 0x3ef   : > { %889 = dma.done.wait (%p731_p2), %s595_s25, 32  }
 0x3f0   : > { %891 = vsyncadd (%p731_p2), %s595_s25, 4294967264  ;;  %p17_p13 = scmp.ge.s32.totalorder %s995_s24, 4   ;;  %s1154_s12 = smov %s898_s13 }
 0x3f1   : > { %s1155_s13 = smov %s902_s14  ;;  %s1156_s14 = smov %s1012_s5 }
 0x3f2   : > { %s1157_s15 = smov %s995_s24  ;;  %19 = sbr.rel (!%p17_p13) target bundleno = 6 (0x6), region = 81 }
 0x3f7   :  { %600 = vsyncpa [#allocation3], 1 }
 0x3f8   :  { %602 = vsyncpa [#allocation3 + $0x1], 1 }
 0x3f9   :  { %603 = vsyncpa [#allocation6], 1 }
 0x3fa   :  { %604 = vsyncpa [#allocation4], 1 }
 0x3fb   :  { %606 = vsyncpa [#allocation4 + $0x1], 1 }

</bundles_post_ra>
